<compile_context>
chip_gen: v7x
topology: tpu7x:2x2x1
jax: 0.10.0
libtpu: 0.0.40
codegen_flags: <defaults>
</compile_context>

<pallas_src>
import functools

import jax
import jax.numpy as jnp
from jax.experimental import pallas as pl
from jax.experimental.pallas import tpu as pltpu

A = 10.0


# ----------------------------------------------------------------------------
# 1) Single-theta forward (module semantics).
# ----------------------------------------------------------------------------
def rastrigin_kernel(theta_ref, out_ref):
    # theta_ref: (1, N) f32 tile in VMEM; out_ref: (1,) f32 scalar in SMEM.
    theta = theta_ref[...]                                    # (1, N)
    n = theta.shape[-1]
    # Single fused reduction: A*N + sum(theta^2 - A*cos(2*pi*theta))
    term = theta * theta - A * jnp.cos((2.0 * jnp.pi) * theta)
    out_ref[0] = A * n + jnp.sum(term)


def rastrigin_pallas(theta_1d):
    # theta_1d: (N,) -> 0-d float32 (kept on device; no host sync here).
    n = theta_1d.shape[0]
    theta_2d = theta_1d.reshape(1, n).astype(jnp.float32)     # lane-major row
    out = pl.pallas_call(
        rastrigin_kernel,
        out_shape=jax.ShapeDtypeStruct((1,), jnp.float32),
        in_specs=[pl.BlockSpec((1, n), lambda: (0, 0))],
        # Scalar result -> 1-D SMEM: no masked 1-lane VMEM store, tiny footprint.
        out_specs=pl.BlockSpec(memory_space=pltpu.MemorySpace.SMEM),
    )(theta_2d)
    return out[0]


# ----------------------------------------------------------------------------
# 2) Batched forward: B thetas per pallas_call (amortizes launch/DMA overhead).
# ----------------------------------------------------------------------------
def rastrigin_batched_kernel(theta_ref, out_ref):
    # theta_ref: (N_pad, B_TILE) f32 — coords on sublanes, batch on lanes.
    # out_ref:   (1, B_TILE) f32   — lane-dense result row (unmasked vst).
    t = theta_ref[...]
    n_pad = t.shape[0]
    term = t * t - A * jnp.cos((2.0 * jnp.pi) * t)
    # A*N_pad keeps zero-padded coordinate rows exact (pad row adds -A, +A cancels).
    out_ref[...] = A * n_pad + jnp.sum(term, axis=0, keepdims=True)


def rastrigin_batched_pallas(thetas, b_tile=128):
    # thetas: (B, N) -> (B,) float32 of Rastrigin values, one per theta.
    B, N = thetas.shape
    n_pad = max(8, ((N + 7) // 8) * 8)                # sublane multiple of 8
    b_pad = ((B + b_tile - 1) // b_tile) * b_tile     # lane multiple of 128
    x = jnp.zeros((n_pad, b_pad), jnp.float32).at[:N, :B].set(
        thetas.astype(jnp.float32).T)
    out = pl.pallas_call(
        rastrigin_batched_kernel,
        out_shape=jax.ShapeDtypeStruct((1, b_pad), jnp.float32),
        grid=(b_pad // b_tile,),
        in_specs=[pl.BlockSpec((n_pad, b_tile), lambda i: (0, i))],
        out_specs=pl.BlockSpec((1, b_tile), lambda i: (0, i)),
        compiler_params=pltpu.CompilerParams(
            dimension_semantics=("parallel",)),       # megacore-shardable on v7x
    )(x)
    return out[0, :B]


# ----------------------------------------------------------------------------
# 3) Scaled-N forward: 1-D reduction grid with accumulator (P3 pattern).
# ----------------------------------------------------------------------------
def rastrigin_tiled_kernel(theta_ref, out_ref, acc_ref, *, n_pad):
    # theta_ref: (1, TN) f32 tile; out_ref: (1,) f32 SMEM; acc_ref: (1,) f32 SMEM.
    pid = pl.program_id(0)

    @pl.when(pid == 0)
    def _():
        acc_ref[0] = 0.0

    t = theta_ref[...]
    term = t * t - A * jnp.cos((2.0 * jnp.pi) * t)
    acc_ref[0] += jnp.sum(term)

    @pl.when(pid == pl.num_programs(0) - 1)
    def _():
        # Padded length keeps zero-padded lanes exact.
        out_ref[0] = A * n_pad + acc_ref[0]


def rastrigin_tiled_pallas(theta_1d, tn=512):
    # theta_1d: (N,) with potentially large N -> 0-d float32.
    # TN=512 f32 tile = 2 KiB x 2 buffers: fits every chip generation's VMEM
    # with huge headroom; bump tn toward 512*128 lanes only if N is in the
    # millions (still well under the v7x 64 MiB / v5e 16 MiB scoped limits).
    n = theta_1d.shape[0]
    n_pad = ((n + tn - 1) // tn) * tn
    x = jnp.zeros((1, n_pad), jnp.float32).at[0, :n].set(
        theta_1d.astype(jnp.float32))
    out = pl.pallas_call(
        functools.partial(rastrigin_tiled_kernel, n_pad=n_pad),
        out_shape=jax.ShapeDtypeStruct((1,), jnp.float32),
        grid=(n_pad // tn,),
        in_specs=[pl.BlockSpec((1, tn), lambda i: (0, i))],
        out_specs=pl.BlockSpec(memory_space=pltpu.MemorySpace.SMEM),
        scratch_shapes=[pltpu.SMEM((1,), jnp.float32)],
        compiler_params=pltpu.CompilerParams(
            dimension_semantics=("arbitrary",)),      # reduction axis
    )(x)
    return out[0]


if __name__ == "__main__":
    num_parameter = 3
    key = jax.random.PRNGKey(0)
    k0, k1, k2 = jax.random.split(key, 3)

    def ref_fn(t):
        return (A * t.shape[-1] + jnp.dot(t, t)
                - A * jnp.sum(jnp.cos(2.0 * jnp.pi * t)))

    # --- 1) Module-semantics single forward (N = 3) ---
    theta = jax.random.normal(k0, (num_parameter,), dtype=jnp.float32)
    fwd = jax.jit(rastrigin_pallas)
    result = fwd(theta)

    # --- 2) Batched forward: 8 thetas in one pallas_call ---
    B = 8
    thetas = jax.random.normal(k1, (B, num_parameter), dtype=jnp.float32)
    fwd_b = jax.jit(rastrigin_batched_pallas)
    result_b = fwd_b(thetas)

    # --- 3) Scaled-N forward: tiled reduction grid ---
    N_big = 1024
    theta_big = jax.random.normal(k2, (N_big,), dtype=jnp.float32)
    fwd_t = jax.jit(rastrigin_tiled_pallas)
    result_t = fwd_t(theta_big)

    jax.block_until_ready((result, result_b, result_t))  # single sync

    # Reference checks in plain JAX (same f32 precision).
    assert jnp.allclose(result, ref_fn(theta), rtol=1e-5, atol=1e-4), \
        (result, ref_fn(theta))
    ref_b = jax.vmap(ref_fn)(thetas)
    assert jnp.allclose(result_b, ref_b, rtol=1e-5, atol=1e-4), (result_b, ref_b)
    assert jnp.allclose(result_t, ref_fn(theta_big), rtol=1e-5, atol=1e-3), \
        (result_t, ref_fn(theta_big))

    print("KERNEL_OK")
</pallas_src>

<mosaic_0001>
module attributes {stable_mosaic.version = 11 : i64} {
  func.func @rastrigin_kernel(%arg0: memref<1x3xf32, #tpu.memory_space<vmem>>, %arg1: memref<1xf32, #tpu.memory_space<smem>>) attributes {dimension_semantics = [], scalar_prefetch = 0 : i64, scratch_operands = 0 : i64, tpu.core_type = #tpu.core_type<tc>} {
    %c0 = arith.constant 0 : index
    %c0_0 = arith.constant 0 : index
    %0 = vector.load %arg0[%c0, %c0_0] : memref<1x3xf32, #tpu.memory_space<vmem>>, vector<1x3xf32>
    %1 = arith.mulf %0, %0 : vector<1x3xf32>
    %cst = arith.constant 6.28318548 : f32
    %2 = vector.broadcast %cst : f32 to vector<1x3xf32>
    %3 = arith.mulf %2, %0 : vector<1x3xf32>
    %4 = math.cos %3 : vector<1x3xf32>
    %cst_1 = arith.constant 1.000000e+01 : f32
    %5 = vector.broadcast %cst_1 : f32 to vector<1x3xf32>
    %6 = arith.mulf %5, %4 : vector<1x3xf32>
    %7 = arith.subf %1, %6 : vector<1x3xf32>
    %8 = vector.shape_cast %7 : vector<1x3xf32> to vector<1x1x3xf32>
    %cst_2 = arith.constant dense<0.000000e+00> : vector<1xf32>
    %9 = vector.multi_reduction <add>, %8, %cst_2 [1, 2] : vector<1x1x3xf32> to vector<1xf32>
    %10 = vector.shape_cast %9 : vector<1xf32> to vector<1x1x1xf32>
    %11 = vector.extract %10[0, 0, 0] : f32 from vector<1x1x1xf32>
    %cst_3 = arith.constant 3.000000e+01 : f32
    %12 = arith.addf %cst_3, %11 : f32
    %c0_4 = arith.constant 0 : index
    %13 = memref.load %arg1[%c0_4] : memref<1xf32, #tpu.memory_space<smem>>
    memref.store %12, %arg1[%c0_4] : memref<1xf32, #tpu.memory_space<smem>>
    return
  }
}

</mosaic_0001>

<bundles_post_ra>
// kernel: rastrigin_pallas.1
= control target key start
LH: loop header
LB: loop body
LE: loop exit
PB: predicated region body
PF: predicated region fallthrough
CT: control target
= control target key end

     0   :  { %s235_s0 = inlined_call_operand.vmem [shape: f32[1,3], index: 0, kind: input, shape index: {}]   ;;  %s236_s1 = inlined_call_operand.hbm [shape: f32[1], index: 1, kind: output, shape index: {}]  }
   0x1   :  { %v197_v0 = vld [vmem:[%s235_s0] sm:$0x1] }
   0x2   :  { %v200_v1 = vmul.f32 6.2831855, %v197_v0 }
   0x4   :  { %v15_v2 = vand.u32 2139095040, %v200_v1 }
   0x5   :  { %6 = vsyncpa [#allocation3], 0  ;;  %v12_v4 = vand.u32 2147483647, %v200_v1  ;;  %v177_v13 = vmov 683565275   ;;  %vm104_vm12 = vweird.f32 %v200_v1 }
   0x6   :  { %v16_v3 = vshrl.u32 %v15_v2, 23  ;;  %v178_v15 = vmov 2475754826   ;;  %v179_v17 = vmov 2131351028   ;;  %vm14_vm7 = vcmp.lt.s32.totalorder %v200_v1, 0 }
   0x7   :  { %v19_v7 = vand.u32 8388607, %v12_v4  ;;  %v180_v19 = vmov 2102212464   ;;  %v181_v21 = vmov 920167782  }
   0x8   :  { %v144_v5 = vadd.s32 4294967169, %v16_v3  ;;  %v182_v28 = vmov 1326507024   ;;  %vm13_vm8 = vcmp.le.f32.partialorder %v12_v4, 0.7853982  ;;  %vm117_vm13 = vcmask 16384  }
   0x9   :  { %v20_v10 = vor.u32 8388608, %v19_v7  ;;  %s165_s11 = scalar_lea.hbm %s236_s1, 16 }
   0xa   :  { %v22_v6 = vadd.s32 1, %v144_v5  ;;  %p166_p0 = scmp.ne.s32.totalorder %s236_s1, %s165_s11  ;;  %p169_p1 = scmp.lt.u32.totalorder %s165_s11, %s236_s1 }
   0xb   :  { %v60_v30 = vshll.u32 %v20_v10, 8 }
   0xc   :  { %vm23_vm0 = vcmp.gt.s32.totalorder %v22_v6, 0  ;;  %p171_p2 = pnand %p169_p1, %p166_p0 }
   0xd   :  { %v24_v8 = vsel %vm23_vm0, %v22_v6, 0 }
   0xe   :  { %v26_v9 = vand.u32 31, %v24_v8  ;;  %v25_v11 = vshrl.u32 %v24_v8, 5 }
  0x10   :  { %v27_v12 = vsub.s32 32, %v26_v9  ;;  %v29_v14 = vshll.u32 %v177_v13, %v26_v9  ;;  %v32_v16 = vshll.u32 %v178_v15, %v26_v9  ;;  %v35_v18 = vshll.u32 %v179_v17, %v26_v9 }
  0x11   :  { %v38_v20 = vshll.u32 %v180_v19, %v26_v9  ;;  %v41_v22 = vshll.u32 %v181_v21, %v26_v9  ;;  %vm44_vm1 = vcmp.lt.s32.totalorder %v25_v11, 1  ;;  %vm47_vm2 = vcmp.lt.s32.totalorder %v25_v11, 4 }
  0x12   :  { %v28_v23 = vshrl.u32 %v177_v13, %v27_v12  ;;  %v30_v24 = vshrl.u32 %v178_v15, %v27_v12  ;;  %v33_v25 = vshrl.u32 %v179_v17, %v27_v12  ;;  %v36_v26 = vshrl.u32 %v180_v19, %v27_v12 }
  0x13   :  { %v39_v27 = vshrl.u32 %v181_v21, %v27_v12  ;;  %v42_v29 = vshrl.u32 %v182_v28, %v27_v12  ;;  %vm45_vm3 = vcmp.lt.s32.totalorder %v25_v11, 2  ;;  %vm46_vm4 = vcmp.lt.s32.totalorder %v25_v11, 3 }
  0x14   :  { %v31_v31 = vor.u32 %v30_v24, %v29_v14  ;;  %v34_v32 = vor.u32 %v33_v25, %v32_v16  ;;  %v37_v33 = vor.u32 %v36_v26, %v35_v18  ;;  %v10_v28 = vmul.f32 %v197_v0, %v197_v0 }
  0x15   :  { %v40_v34 = vor.u32 %v39_v27, %v38_v20  ;;  %v43_v35 = vor.u32 %v42_v29, %v41_v22 }
  0x16   :  { %v48_v36 = vsel %vm44_vm1, %v28_v23, %v31_v31  ;;  %v49_v37 = vsel %vm47_vm2, %v37_v33, 2102212464  ;;  %v52_v38 = vsel %vm44_vm1, %v31_v31, %v34_v32  ;;  %v56_v39 = vsel %vm44_vm1, %v34_v32, %v37_v33 }
  0x17   :  { %v50_v40 = vsel %vm46_vm4, %v34_v32, %v49_v37  ;;  %v53_v41 = vsel %vm47_vm2, %v40_v34, 920167782  ;;  %v57_v42 = vsel %vm47_vm2, %v43_v35, 1326507024 }
  0x18   :  { %v54_v43 = vsel %vm46_vm4, %v37_v33, %v53_v41  ;;  %v58_v44 = vsel %vm46_vm4, %v40_v34, %v57_v42  ;;  %v51_v45 = vsel %vm45_vm3, %v48_v36, %v50_v40 }
  0x19   :  { %v55_v46 = vsel %vm45_vm3, %v52_v38, %v54_v43  ;;  %v59_v47 = vsel %vm45_vm3, %v56_v39, %v58_v44  ;;  %v67_v52 = vmul.u32 %v60_v30, %v51_v45 }
  0x1a   :  { %v206_v48 = vmul.u32.u64.low %v60_v30, %v59_v47  ;;  %v207_v49 = vmul.u32.u64.high %v60_v30, %v59_v47, %v206_v48  ;;  %v209_v50 = vmul.u32.u64.low %v60_v30, %v55_v46  ;;  %v210_v51 = vmul.u32.u64.high %v60_v30, %v55_v46, %v209_v50 }
  0x1c   :  { %vm69_vm5 = vc.u32 %v207_v49, %v209_v50  ;;  %v70_v53 = vadd.s32 1, %v210_v51  ;;  %v68_v2 = vadd.s32 %v209_v50, %v207_v49 }
  0x1e   :  { %v71_v54 = vsel %vm69_vm5, %v70_v53, %v210_v51 }
  0x1f   :  { %v72_v55 = vadd.s32 %v71_v54, %v67_v52 }
  0x21   :  { %v73_v56 = vadd.s32 536870912, %v72_v55 }
  0x23   :  { %v74_v57 = vshrl.u32 %v73_v56, 30 }
  0x25   :  { %v75_v58 = vshll.u32 %v74_v57, 30  ;;  %v98_v17 = vsub.s32 4, %v74_v57 }
  0x27   :  { %v76_v59 = vsub.s32 %v72_v55, %v75_v58  ;;  %v99_v20 = vsel %vm14_vm7, %v98_v17, %v74_v57 }
  0x28   :  { %v101_v21 = vsel %vm13_vm8, 0, %v99_v20 }
  0x29   :  { %v78_v60 = vsub.s32 0, %v76_v59  ;;  %v105_v22 = vand.u32 3, %v101_v21 }
  0x2b   :  { %v145_v61 = vmin.u32 %v78_v60, %v76_v59  ;;  %vm110_vm9 = vcmp.eq.s32.totalorder %v105_v22, 2  ;;  %vm107_vm10 = vcmp.eq.s32.totalorder %v105_v22, 0  ;;  %vm106_vm11 = vcmp.lt.s32.totalorder %v105_v22, 2 }
  0x2d   :  { %v80_v62 = vclz %v145_v61 }
  0x2f   :  { %v146_v63 = vadd.s32 4294967294, %v80_v62 }
  0x31   :  { %vm147_vm6 = vcmp.lt.s32.totalorder %v146_v63, 0 }
  0x32   :  { %v83_v3 = vsel %vm147_vm6, 0, %v146_v63 }
  0x33   :  { %v84_v5 = vsub.s32 32, %v83_v3  ;;  %v85_v6 = vshll.u32 %v76_v59, %v83_v3  ;;  %v88_v7 = vsub.s32 4294967266, %v83_v3 }
  0x35   :  { %v86_v8 = vshrl.u32 %v68_v2, %v84_v5  ;;  %v89_v9 = vadd.s32 127, %v88_v7 }
  0x37   :  { %v87_v10 = vor.u32 %v86_v8, %v85_v6  ;;  %v90_v11 = vshll.u32 %v89_v9, 23 }
  0x39   :  { %v91_v12 = vor.u32 4788187, %v90_v11  ;;  %v94_v13 = vcvt.s32.f32 %v87_v10 }
  0x3b   :  { %v92_v14 = vand.u32 2147483647, %v91_v12 }
  0x3d   :  { %v95_v15 = vmul.f32 %v94_v13, %v92_v14 }
  0x3f   :  { %v96_v16 = vxor.u32 2147483648, %v95_v15 }
  0x41   :  { %v97_v18 = vsel %vm14_vm7, %v96_v16, %v95_v15 }
  0x42   :  { %v100_v19 = vsel %vm13_vm8, %v200_v1, %v97_v18 }
  0x43   :  { %161 = vcosq.f32 %v100_v19 }
  0x44   :  { %163 = vsinq.f32 %v100_v19 }
  0x4d   :  { %v162_v23 = vpop.eup %161 }
  0x4e   :  { %v164_v24 = vpop.eup %163  ;;  %v111_v25 = vxor.u32 2147483648, %v162_v23 }
  0x4f   :  { %v108_v26 = vxor.u32 2147483648, %v164_v24 }
  0x50   :  { %v112_v4 = vsel %vm110_vm9, %v111_v25, %v164_v24 }
  0x51   :  { %v109_v27 = vsel %vm107_vm10, %v162_v23, %v108_v26 }
  0x52   :  { %v113_v29 = vsel %vm106_vm11, %v109_v27, %v112_v4 }
  0x53   :  { %v114_v30 = vsel %vm104_vm12, nan, %v113_v29 }
  0x54   :  { %v115_v31 = vmul.f32 10.0, %v114_v30 }
  0x56   :  { %v116_v32 = vsub.f32 %v10_v28, %v115_v31 }
  0x58   :  { %v118_v33 = vsel %vm117_vm13, %v116_v32, 0.0 }
  0x59   :  { %119 = vadd.xlane.f32.xlu0 %v118_v33 }
  0xe6   :  { %v120_v34 = vpop.xlane.xlu0 %119 }
  0xe7   :  { %v121_v35 = vrot.slane %v120_v34, 4 }
  0xe9   :  { %v122_v36 = vadd.f32 %v121_v35, %v120_v34 }
  0xeb   :  { %v123_v37 = vrot.slane %v122_v36, 2 }
  0xed   :  { %v124_v38 = vadd.f32 %v123_v37, %v122_v36 }
  0xef   :  { %v125_v39 = vrot.slane %v124_v38, 1 }
  0xf1   :  { %v126_v40 = vadd.f32 %v125_v39, %v124_v38 }
  0xf3   :  { %152 = vpush %v126_v40 }
 0x124   :  { %s153_s0 = spop %152 }
 0x125   :  { %s128_s8 = sadd.f32 30.0, %s153_s0 }
 0x127   :  { %130 = sst [smem:[#allocation2]] %s128_s8 }
 0x128   :  { %174 = shalt.err (!%p171_p2)
}
 0x129   :  { %s183_s16 = smov [#allocation2]  }
 0x12a   :  { %138 = dma.smem_to_hbm %s183_s16, 16, %s236_s1, [#allocation3]  }
 0x12b   :  { %175 = dma.done.wait [#allocation3], 16  }
 0x12c   :  { %176 = vsyncadd [#allocation3], 4294967280 }
 0x12d   :  { %142 = sfence }
 0x12e   :  { %143 = vsyncpa [#allocation3], 1 }

</bundles_post_ra>
